<compile_context>
chip_gen: v5e
topology: v5e:2x2
jax: 0.10.0
libtpu: 0.0.40
codegen_flags: <defaults>
</compile_context>

<pallas_src>
import functools

import jax
import jax.numpy as jnp
from jax.experimental import pallas as pl
from jax.experimental.pallas import tpu as pltpu


def self_attention_kernel(x_ref, mask_ref, w_in_ref, w_out_ref, b_out_ref,
                          o_ref, ctx_ref, *, heads, head_dim, embed_size):
    BN, S, _ = x_ref.shape
    H, D, E = heads, head_dim, embed_size
    f32, bf16 = jnp.float32, jnp.bfloat16

    # ---- fused QKV projection: one (BN*S, pad_in) @ (pad_in, 3E) MXU matmul.
    # w_in is block-diagonal [Wv^T; Wk^T; Wq^T/sqrt(E)] (scale pre-folded), so
    # proj columns are [v (E) | k (E) | q_scaled (E)].
    x2d = x_ref[...].reshape(BN * S, x_ref.shape[-1])            # bf16 already
    proj = jnp.dot(x2d, w_in_ref[...], preferred_element_type=f32)
    proj = proj.astype(bf16)

    # Additive mask bias computed once (mask streamed as int8).
    m = mask_ref[...].astype(jnp.int32)                          # (BN, S, S)
    mask_bias = jnp.where(m == 0, f32(-1e20), f32(0.0))

    # TODO(synk): batch the per-head energy/PV einsums over heads (needs
    # multi-batch dot_general / mid-axis transpose support in Mosaic); the
    # static loop below keeps D-wide lane slices instead.
    # TODO(synk): flash-style K-tiled online softmax for large S so the
    # (BN, S, S) fp32 working set fits v7x's 64 MiB VMEM.
    for h in range(H):
        lo = h * D
        v_h = proj[:, lo:lo + D].reshape(BN, S, D)
        k_h = proj[:, E + lo:E + lo + D].reshape(BN, S, D)
        q_h = proj[:, 2 * E + lo:2 * E + lo + D].reshape(BN, S, D)

        energy = jnp.einsum('bqd,bkd->bqk', q_h, k_h,
                            preferred_element_type=f32)          # (BN, S, S)
        logits = energy + mask_bias
        logits = logits - jnp.max(logits, axis=-1, keepdims=True)
        p = jnp.exp(logits)
        attn = (p * pl.reciprocal(jnp.sum(p, axis=-1, keepdims=True),
                                  approx=True)).astype(bf16)
        ctx_h = jnp.einsum('bqk,bkd->bqd', attn, v_h,
                           preferred_element_type=f32)           # (BN, S, D)
        ctx_ref[:, lo:lo + D] = ctx_h.reshape(BN * S, D).astype(bf16)

    # ---- single deep output projection (K = E) onto a 128-lane padded axis.
    out = jnp.dot(ctx_ref[...], w_out_ref[...], preferred_element_type=f32)
    out = out + b_out_ref[...]                                   # (1, pad_out)
    o_ref[...] = out.reshape(BN, S, o_ref.shape[-1]).astype(o_ref.dtype)


def self_attention(values, keys, query, mask, wv, wk, wq, wo, bo, *, heads,
                   block_n=None):
    """values/keys/query: (N, S, E); mask: (N, 1, S, S) int (0 == masked).
    wv/wk/wq/wo: (E, E) PyTorch-layout (out, in); bo: (E,)."""
    N, S, E = query.shape
    assert E % heads == 0
    head_dim = E // heads
    f32, bf16 = jnp.float32, jnp.bfloat16

    padded_in = pl.cdiv(3 * E, 128) * 128      # lane-dense input feature axis
    padded_out = pl.cdiv(E, 128) * 128         # lane-dense output feature axis

    # ---- batch-chunk size -------------------------------------------------
    if block_n is None:
        # 256 MXU rows per projection pass fills the 256-wide v6e/v7x arrays;
        # 128 already suffices on v5e.
        target_rows = 256
        block_n = max(1, min(N, pl.cdiv(target_rows, S)))
    if N >= 2:
        block_n = max(1, min(block_n, N // 2))   # >=2 grid steps: both v7x TCs
    while N % block_n:                            # keep every block full
        block_n -= 1
    BN = block_n

    # ---- wrapper-side layout plumbing (lane-dense, bf16, int8 mask) -------
    x_cat = jnp.concatenate([values, keys, query], axis=-1)      # (N, S, 3E)
    if padded_in > 3 * E:
        x_cat = jnp.pad(x_cat, ((0, 0), (0, 0), (0, padded_in - 3 * E)))
    x_cat = x_cat.astype(bf16)

    mask_i8 = mask.reshape(N, S, S).astype(jnp.int8)

    scale = 1.0 / (float(E) ** 0.5)
    w_in = jnp.zeros((padded_in, 3 * E), f32)
    w_in = w_in.at[0:E, 0:E].set(wv.T)
    w_in = w_in.at[E:2 * E, E:2 * E].set(wk.T)
    w_in = w_in.at[2 * E:3 * E, 2 * E:3 * E].set(wq.T * scale)
    w_in = w_in.astype(bf16)

    w_out = jnp.zeros((E, padded_out), f32).at[:, 0:E].set(wo.T).astype(bf16)
    b_out = jnp.zeros((1, padded_out), f32).at[:, 0:E].set(bo.reshape(1, E))

    # ---- VMEM budget: double-buffered streams + in-kernel temporaries -----
    bytes_stream = 2 * (BN * S * padded_in * 2          # x   (bf16)
                        + BN * S * S                     # mask (int8)
                        + BN * S * padded_out * 4)       # out (f32)
    bytes_weights = 2 * (padded_in * 3 * E * 2 + E * padded_out * 2
                         + padded_out * 4)
    bytes_interm = (BN * S * 3 * E * 6                   # proj (f32 + bf16)
                    + 6 * BN * S * S * 4                 # energy/logits/p/attn
                    + BN * S * E * 2)                    # ctx scratch
    vmem_limit = int(min(max(2 * (bytes_stream + bytes_weights + bytes_interm),
                             32 << 20), 64 << 20))

    kernel = functools.partial(self_attention_kernel, heads=heads,
                               head_dim=head_dim, embed_size=E)

    out_padded = pl.pallas_call(
        kernel,
        out_shape=jax.ShapeDtypeStruct((N, S, padded_out), query.dtype),
        grid=(N // BN,),
        in_specs=[
            pl.BlockSpec((BN, S, padded_in), lambda n: (n, 0, 0)),   # v|k|q|pad
            pl.BlockSpec((BN, S, S), lambda n: (n, 0, 0)),           # mask int8
            pl.BlockSpec((padded_in, 3 * E), lambda n: (0, 0)),      # W_qkv blkdiag
            pl.BlockSpec((E, padded_out), lambda n: (0, 0)),         # Wo^T padded
            pl.BlockSpec((1, padded_out), lambda n: (0, 0)),         # bias padded
        ],
        out_specs=pl.BlockSpec((BN, S, padded_out), lambda n: (n, 0, 0)),
        scratch_shapes=[pltpu.VMEM((BN * S, E), bf16)],              # ctx concat
        compiler_params=pltpu.CompilerParams(
            dimension_semantics=("parallel",),
            vmem_limit_bytes=vmem_limit),
    )(x_cat, mask_i8, w_in, w_out, b_out)

    return out_padded[..., :E]


def self_attention_ref(values, keys, query, mask, wv, wk, wq, wo, bo, heads):
    """Pure-JAX mirror of the PyTorch forward, for verification."""
    N, S, E = query.shape
    D = E // heads
    v = values @ wv.T
    q = query @ wq.T
    k = keys @ wk.T
    v = v.reshape(N, S, heads, D)
    k = k.reshape(N, S, heads, D)
    q = q.reshape(N, S, heads, D)
    energy = jnp.einsum('nqhd,nkhd->nhqk', q, k)
    energy = jnp.where(mask == 0, -1e20, energy)
    attn = jax.nn.softmax(energy / (E ** 0.5), axis=3)
    out = jnp.einsum('nhql,nlhd->nqhd', attn, v).reshape(N, S, E)
    return out @ wo.T + bo


if __name__ == "__main__":
    N, S, E, H = 2, 8, 32, 4

    key = jax.random.PRNGKey(0)
    ks = jax.random.split(key, 9)
    values_in = jax.random.normal(ks[0], (N, S, E), jnp.float32)
    keys_in = jax.random.normal(ks[1], (N, S, E), jnp.float32)
    query_in = jax.random.normal(ks[2], (N, S, E), jnp.float32)
    # Mask broadcastable over heads: (N, 1, q_len, k_len), 0 == masked out.
    mask = (jax.random.uniform(ks[3], (N, 1, S, S)) > 0.2).astype(jnp.int32)

    # Deterministic parameter init (PyTorch Linear default: U(-1/sqrt(fan_in), +)).
    bound = 1.0 / (E ** 0.5)
    wv = jax.random.uniform(ks[4], (E, E), jnp.float32, -bound, bound)
    wk = jax.random.uniform(ks[5], (E, E), jnp.float32, -bound, bound)
    wq = jax.random.uniform(ks[6], (E, E), jnp.float32, -bound, bound)
    wo = jax.random.uniform(ks[7], (E, E), jnp.float32, -bound, bound)
    bo = jax.random.uniform(ks[8], (E,), jnp.float32, -bound, bound)

    out = self_attention(values_in, keys_in, query_in, mask,
                         wv, wk, wq, wo, bo, heads=H)
    out = jax.block_until_ready(out)

    ref = self_attention_ref(values_in, keys_in, query_in, mask,
                             wv, wk, wq, wo, bo, H)
    assert out.shape == (N, S, E)
    assert jnp.allclose(out, ref, atol=2e-2, rtol=2e-2), "mismatch vs pure-JAX reference"

    print("KERNEL_OK")
</pallas_src>

<mosaic_0001>
module attributes {stable_mosaic.version = 11 : i64} {
  func.func @self_attention_kernel(%arg0: i32, %arg1: memref<1x8x128xbf16, #tpu.memory_space<vmem>>, %arg2: memref<1x8x8xi8, #tpu.memory_space<vmem>>, %arg3: memref<128x96xbf16, #tpu.memory_space<vmem>>, %arg4: memref<32x128xbf16, #tpu.memory_space<vmem>>, %arg5: memref<1x128xf32, #tpu.memory_space<vmem>>, %arg6: memref<1x8x128xf32, #tpu.memory_space<vmem>>, %arg7: memref<8x32xbf16, #tpu.memory_space<vmem>>) attributes {dimension_semantics = [#tpu.dimension_semantics<parallel>], iteration_bounds = array<i64: 2>, scalar_prefetch = 0 : i64, scratch_operands = 1 : i64, tpu.core_type = #tpu.core_type<tc>, window_params = [{transform_indices = @transform_0, window_bounds = array<i64: 1, 8, 128>}, {transform_indices = @transform_1, window_bounds = array<i64: 1, 8, 8>}, {pipeline_mode = #tpu.pipeline_mode<synchronous>, transform_indices = @transform_2, window_bounds = array<i64: 128, 96>}, {pipeline_mode = #tpu.pipeline_mode<synchronous>, transform_indices = @transform_3, window_bounds = array<i64: 32, 128>}, {pipeline_mode = #tpu.pipeline_mode<synchronous>, transform_indices = @transform_4, window_bounds = array<i64: 1, 128>}, {transform_indices = @transform_5, window_bounds = array<i64: 1, 8, 128>}]} {
    %c0 = arith.constant 0 : index
    %c0_0 = arith.constant 0 : index
    %c0_1 = arith.constant 0 : index
    %0 = vector.load %arg1[%c0, %c0_0, %c0_1] : memref<1x8x128xbf16, #tpu.memory_space<vmem>>, vector<1x8x128xbf16>
    %1 = vector.shape_cast %0 : vector<1x8x128xbf16> to vector<8x128xbf16>
    %c0_2 = arith.constant 0 : index
    %c0_3 = arith.constant 0 : index
    %2 = vector.load %arg3[%c0_2, %c0_3] : memref<128x96xbf16, #tpu.memory_space<vmem>>, vector<128x96xbf16>
    %cst = arith.constant dense<0.000000e+00> : vector<8x96xf32>
    %3 = tpu.matmul %1, %2, %cst {dimension_numbers = #tpu.dot_dimension_numbers<[1], [0], [0], [1], [0, 0, 1, 1], [], []>} : vector<8x128xbf16>, vector<128x96xbf16>, vector<8x96xf32> -> vector<8x96xf32>
    %4 = arith.truncf %3 : vector<8x96xf32> to vector<8x96xbf16>
    %c0_4 = arith.constant 0 : index
    %c0_5 = arith.constant 0 : index
    %c0_6 = arith.constant 0 : index
    %5 = vector.load %arg2[%c0_4, %c0_5, %c0_6] : memref<1x8x8xi8, #tpu.memory_space<vmem>>, vector<1x8x8xi8>
    %6 = arith.extsi %5 : vector<1x8x8xi8> to vector<1x8x8xi32>
    %c0_i32 = arith.constant 0 : i32
    %7 = vector.broadcast %c0_i32 : i32 to vector<1x8x8xi32>
    %8 = arith.cmpi eq, %6, %7 : vector<1x8x8xi32>
    %cst_7 = arith.constant -1.000000e+20 : f32
    %cst_8 = arith.constant 0.000000e+00 : f32
    %9 = vector.broadcast %cst_7 : f32 to vector<1x8x8xf32>
    %10 = vector.broadcast %cst_8 : f32 to vector<1x8x8xf32>
    %11 = arith.select %8, %9, %10 : vector<1x8x8xi1>, vector<1x8x8xf32>
    %12 = vector.extract_strided_slice %4 {offsets = [0, 0], sizes = [8, 8], strides = [1, 1]} : vector<8x96xbf16> to vector<8x8xbf16>
    %13 = vector.shape_cast %12 : vector<8x8xbf16> to vector<1x8x8xbf16>
    %14 = vector.extract_strided_slice %4 {offsets = [0, 32], sizes = [8, 8], strides = [1, 1]} : vector<8x96xbf16> to vector<8x8xbf16>
    %15 = vector.shape_cast %14 : vector<8x8xbf16> to vector<1x8x8xbf16>
    %16 = vector.extract_strided_slice %4 {offsets = [0, 64], sizes = [8, 8], strides = [1, 1]} : vector<8x96xbf16> to vector<8x8xbf16>
    %17 = vector.shape_cast %16 : vector<8x8xbf16> to vector<1x8x8xbf16>
    "tpu.trace_start"() <{level = 10 : i32, message = "bqd,bkd->bqk"}> : () -> ()
    %cst_9 = arith.constant dense<0.000000e+00> : vector<1x8x8xf32>
    %18 = tpu.matmul %17, %15, %cst_9 {dimension_numbers = #tpu.dot_dimension_numbers<[2], [2], [1], [1], [0, 0, 0, 1, 1, 1], [0], [0]>} : vector<1x8x8xbf16>, vector<1x8x8xbf16>, vector<1x8x8xf32> -> vector<1x8x8xf32>
    "tpu.trace_stop"() : () -> ()
    %19 = arith.addf %18, %11 : vector<1x8x8xf32>
    %cst_10 = arith.constant dense<0xFF800000> : vector<1x8xf32>
    %20 = vector.multi_reduction <maximumf>, %19, %cst_10 [2] : vector<1x8x8xf32> to vector<1x8xf32>
    %21 = vector.shape_cast %20 : vector<1x8xf32> to vector<1x8x1xf32>
    %22 = vector.broadcast %21 : vector<1x8x1xf32> to vector<1x8x8xf32>
    %23 = arith.subf %19, %22 : vector<1x8x8xf32>
    %24 = math.exp %23 : vector<1x8x8xf32>
    %cst_11 = arith.constant dense<0.000000e+00> : vector<1x8xf32>
    %25 = vector.multi_reduction <add>, %24, %cst_11 [2] : vector<1x8x8xf32> to vector<1x8xf32>
    %26 = vector.shape_cast %25 : vector<1x8xf32> to vector<1x8x1xf32>
    %27 = tpu.reciprocal %26 {approx = true} : vector<1x8x1xf32> -> vector<1x8x1xf32>
    %28 = vector.broadcast %27 : vector<1x8x1xf32> to vector<1x8x8xf32>
    %29 = arith.mulf %24, %28 : vector<1x8x8xf32>
    %30 = arith.truncf %29 : vector<1x8x8xf32> to vector<1x8x8xbf16>
    "tpu.trace_start"() <{level = 10 : i32, message = "bqk,bkd->bqd"}> : () -> ()
    %cst_12 = arith.constant dense<0.000000e+00> : vector<1x8x8xf32>
    %31 = tpu.matmul %30, %13, %cst_12 {dimension_numbers = #tpu.dot_dimension_numbers<[2], [1], [1], [2], [0, 0, 0, 1, 1, 2], [0], [0]>} : vector<1x8x8xbf16>, vector<1x8x8xbf16>, vector<1x8x8xf32> -> vector<1x8x8xf32>
    "tpu.trace_stop"() : () -> ()
    %32 = vector.shape_cast %31 : vector<1x8x8xf32> to vector<8x8xf32>
    %33 = arith.truncf %32 : vector<8x8xf32> to vector<8x8xbf16>
    %c0_13 = arith.constant 0 : index
    %c0_14 = arith.constant 0 : index
    %34 = vector.load %arg7[%c0_13, %c0_14] : memref<8x32xbf16, #tpu.memory_space<vmem>>, vector<8x8xbf16>
    tpu.vector_store %arg7[%c0_13, %c0_14], %33 {strides = array<i32>} : memref<8x32xbf16, #tpu.memory_space<vmem>>, vector<8x8xbf16>,
    %35 = vector.extract_strided_slice %4 {offsets = [0, 8], sizes = [8, 8], strides = [1, 1]} : vector<8x96xbf16> to vector<8x8xbf16>
    %36 = vector.shape_cast %35 : vector<8x8xbf16> to vector<1x8x8xbf16>
    %37 = vector.extract_strided_slice %4 {offsets = [0, 40], sizes = [8, 8], strides = [1, 1]} : vector<8x96xbf16> to vector<8x8xbf16>
    %38 = vector.shape_cast %37 : vector<8x8xbf16> to vector<1x8x8xbf16>
    %39 = vector.extract_strided_slice %4 {offsets = [0, 72], sizes = [8, 8], strides = [1, 1]} : vector<8x96xbf16> to vector<8x8xbf16>
    %40 = vector.shape_cast %39 : vector<8x8xbf16> to vector<1x8x8xbf16>
    "tpu.trace_start"() <{level = 10 : i32, message = "bqd,bkd->bqk"}> : () -> ()
    %cst_15 = arith.constant dense<0.000000e+00> : vector<1x8x8xf32>
    %41 = tpu.matmul %40, %38, %cst_15 {dimension_numbers = #tpu.dot_dimension_numbers<[2], [2], [1], [1], [0, 0, 0, 1, 1, 1], [0], [0]>} : vector<1x8x8xbf16>, vector<1x8x8xbf16>, vector<1x8x8xf32> -> vector<1x8x8xf32>
    "tpu.trace_stop"() : () -> ()
    %42 = arith.addf %41, %11 : vector<1x8x8xf32>
    %cst_16 = arith.constant dense<0xFF800000> : vector<1x8xf32>
    %43 = vector.multi_reduction <maximumf>, %42, %cst_16 [2] : vector<1x8x8xf32> to vector<1x8xf32>
    %44 = vector.shape_cast %43 : vector<1x8xf32> to vector<1x8x1xf32>
    %45 = vector.broadcast %44 : vector<1x8x1xf32> to vector<1x8x8xf32>
    %46 = arith.subf %42, %45 : vector<1x8x8xf32>
    %47 = math.exp %46 : vector<1x8x8xf32>
    %cst_17 = arith.constant dense<0.000000e+00> : vector<1x8xf32>
    %48 = vector.multi_reduction <add>, %47, %cst_17 [2] : vector<1x8x8xf32> to vector<1x8xf32>
    %49 = vector.shape_cast %48 : vector<1x8xf32> to vector<1x8x1xf32>
    %50 = tpu.reciprocal %49 {approx = true} : vector<1x8x1xf32> -> vector<1x8x1xf32>
    %51 = vector.broadcast %50 : vector<1x8x1xf32> to vector<1x8x8xf32>
    %52 = arith.mulf %47, %51 : vector<1x8x8xf32>
    %53 = arith.truncf %52 : vector<1x8x8xf32> to vector<1x8x8xbf16>
    "tpu.trace_start"() <{level = 10 : i32, message = "bqk,bkd->bqd"}> : () -> ()
    %cst_18 = arith.constant dense<0.000000e+00> : vector<1x8x8xf32>
    %54 = tpu.matmul %53, %36, %cst_18 {dimension_numbers = #tpu.dot_dimension_numbers<[2], [1], [1], [2], [0, 0, 0, 1, 1, 2], [0], [0]>} : vector<1x8x8xbf16>, vector<1x8x8xbf16>, vector<1x8x8xf32> -> vector<1x8x8xf32>
    "tpu.trace_stop"() : () -> ()
    %55 = vector.shape_cast %54 : vector<1x8x8xf32> to vector<8x8xf32>
    %56 = arith.truncf %55 : vector<8x8xf32> to vector<8x8xbf16>
    %c0_19 = arith.constant 0 : index
    %c8 = arith.constant 8 : index
    %57 = vector.load %arg7[%c0_19, %c8] : memref<8x32xbf16, #tpu.memory_space<vmem>>, vector<8x8xbf16>
    tpu.vector_store %arg7[%c0_19, %c8], %56 {strides = array<i32>} : memref<8x32xbf16, #tpu.memory_space<vmem>>, vector<8x8xbf16>,
    %58 = vector.extract_strided_slice %4 {offsets = [0, 16], sizes = [8, 8], strides = [1, 1]} : vector<8x96xbf16> to vector<8x8xbf16>
    %59 = vector.shape_cast %58 : vector<8x8xbf16> to vector<1x8x8xbf16>
    %60 = vector.extract_strided_slice %4 {offsets = [0, 48], sizes = [8, 8], strides = [1, 1]} : vector<8x96xbf16> to vector<8x8xbf16>
    %61 = vector.shape_cast %60 : vector<8x8xbf16> to vector<1x8x8xbf16>
    %62 = vector.extract_strided_slice %4 {offsets = [0, 80], sizes = [8, 8], strides = [1, 1]} : vector<8x96xbf16> to vector<8x8xbf16>
    %63 = vector.shape_cast %62 : vector<8x8xbf16> to vector<1x8x8xbf16>
    "tpu.trace_start"() <{level = 10 : i32, message = "bqd,bkd->bqk"}> : () -> ()
    %cst_20 = arith.constant dense<0.000000e+00> : vector<1x8x8xf32>
    %64 = tpu.matmul %63, %61, %cst_20 {dimension_numbers = #tpu.dot_dimension_numbers<[2], [2], [1], [1], [0, 0, 0, 1, 1, 1], [0], [0]>} : vector<1x8x8xbf16>, vector<1x8x8xbf16>, vector<1x8x8xf32> -> vector<1x8x8xf32>
    "tpu.trace_stop"() : () -> ()
    %65 = arith.addf %64, %11 : vector<1x8x8xf32>
    %cst_21 = arith.constant dense<0xFF800000> : vector<1x8xf32>
    %66 = vector.multi_reduction <maximumf>, %65, %cst_21 [2] : vector<1x8x8xf32> to vector<1x8xf32>
    %67 = vector.shape_cast %66 : vector<1x8xf32> to vector<1x8x1xf32>
    %68 = vector.broadcast %67 : vector<1x8x1xf32> to vector<1x8x8xf32>
    %69 = arith.subf %65, %68 : vector<1x8x8xf32>
    %70 = math.exp %69 : vector<1x8x8xf32>
    %cst_22 = arith.constant dense<0.000000e+00> : vector<1x8xf32>
    %71 = vector.multi_reduction <add>, %70, %cst_22 [2] : vector<1x8x8xf32> to vector<1x8xf32>
    %72 = vector.shape_cast %71 : vector<1x8xf32> to vector<1x8x1xf32>
    %73 = tpu.reciprocal %72 {approx = true} : vector<1x8x1xf32> -> vector<1x8x1xf32>
    %74 = vector.broadcast %73 : vector<1x8x1xf32> to vector<1x8x8xf32>
    %75 = arith.mulf %70, %74 : vector<1x8x8xf32>
    %76 = arith.truncf %75 : vector<1x8x8xf32> to vector<1x8x8xbf16>
    "tpu.trace_start"() <{level = 10 : i32, message = "bqk,bkd->bqd"}> : () -> ()
    %cst_23 = arith.constant dense<0.000000e+00> : vector<1x8x8xf32>
    %77 = tpu.matmul %76, %59, %cst_23 {dimension_numbers = #tpu.dot_dimension_numbers<[2], [1], [1], [2], [0, 0, 0, 1, 1, 2], [0], [0]>} : vector<1x8x8xbf16>, vector<1x8x8xbf16>, vector<1x8x8xf32> -> vector<1x8x8xf32>
    "tpu.trace_stop"() : () -> ()
    %78 = vector.shape_cast %77 : vector<1x8x8xf32> to vector<8x8xf32>
    %79 = arith.truncf %78 : vector<8x8xf32> to vector<8x8xbf16>
    %c0_24 = arith.constant 0 : index
    %c16 = arith.constant 16 : index
    %80 = vector.load %arg7[%c0_24, %c16] : memref<8x32xbf16, #tpu.memory_space<vmem>>, vector<8x8xbf16>
    tpu.vector_store %arg7[%c0_24, %c16], %79 {strides = array<i32>} : memref<8x32xbf16, #tpu.memory_space<vmem>>, vector<8x8xbf16>,
    %81 = vector.extract_strided_slice %4 {offsets = [0, 24], sizes = [8, 8], strides = [1, 1]} : vector<8x96xbf16> to vector<8x8xbf16>
    %82 = vector.shape_cast %81 : vector<8x8xbf16> to vector<1x8x8xbf16>
    %83 = vector.extract_strided_slice %4 {offsets = [0, 56], sizes = [8, 8], strides = [1, 1]} : vector<8x96xbf16> to vector<8x8xbf16>
    %84 = vector.shape_cast %83 : vector<8x8xbf16> to vector<1x8x8xbf16>
    %85 = vector.extract_strided_slice %4 {offsets = [0, 88], sizes = [8, 8], strides = [1, 1]} : vector<8x96xbf16> to vector<8x8xbf16>
    %86 = vector.shape_cast %85 : vector<8x8xbf16> to vector<1x8x8xbf16>
    "tpu.trace_start"() <{level = 10 : i32, message = "bqd,bkd->bqk"}> : () -> ()
    %cst_25 = arith.constant dense<0.000000e+00> : vector<1x8x8xf32>
    %87 = tpu.matmul %86, %84, %cst_25 {dimension_numbers = #tpu.dot_dimension_numbers<[2], [2], [1], [1], [0, 0, 0, 1, 1, 1], [0], [0]>} : vector<1x8x8xbf16>, vector<1x8x8xbf16>, vector<1x8x8xf32> -> vector<1x8x8xf32>
    "tpu.trace_stop"() : () -> ()
    %88 = arith.addf %87, %11 : vector<1x8x8xf32>
    %cst_26 = arith.constant dense<0xFF800000> : vector<1x8xf32>
    %89 = vector.multi_reduction <maximumf>, %88, %cst_26 [2] : vector<1x8x8xf32> to vector<1x8xf32>
    %90 = vector.shape_cast %89 : vector<1x8xf32> to vector<1x8x1xf32>
    %91 = vector.broadcast %90 : vector<1x8x1xf32> to vector<1x8x8xf32>
    %92 = arith.subf %88, %91 : vector<1x8x8xf32>
    %93 = math.exp %92 : vector<1x8x8xf32>
    %cst_27 = arith.constant dense<0.000000e+00> : vector<1x8xf32>
    %94 = vector.multi_reduction <add>, %93, %cst_27 [2] : vector<1x8x8xf32> to vector<1x8xf32>
    %95 = vector.shape_cast %94 : vector<1x8xf32> to vector<1x8x1xf32>
    %96 = tpu.reciprocal %95 {approx = true} : vector<1x8x1xf32> -> vector<1x8x1xf32>
    %97 = vector.broadcast %96 : vector<1x8x1xf32> to vector<1x8x8xf32>
    %98 = arith.mulf %93, %97 : vector<1x8x8xf32>
    %99 = arith.truncf %98 : vector<1x8x8xf32> to vector<1x8x8xbf16>
    "tpu.trace_start"() <{level = 10 : i32, message = "bqk,bkd->bqd"}> : () -> ()
    %cst_28 = arith.constant dense<0.000000e+00> : vector<1x8x8xf32>
    %100 = tpu.matmul %99, %82, %cst_28 {dimension_numbers = #tpu.dot_dimension_numbers<[2], [1], [1], [2], [0, 0, 0, 1, 1, 2], [0], [0]>} : vector<1x8x8xbf16>, vector<1x8x8xbf16>, vector<1x8x8xf32> -> vector<1x8x8xf32>
    "tpu.trace_stop"() : () -> ()
    %101 = vector.shape_cast %100 : vector<1x8x8xf32> to vector<8x8xf32>
    %102 = arith.truncf %101 : vector<8x8xf32> to vector<8x8xbf16>
    %c0_29 = arith.constant 0 : index
    %c24 = arith.constant 24 : index
    %103 = vector.load %arg7[%c0_29, %c24] : memref<8x32xbf16, #tpu.memory_space<vmem>>, vector<8x8xbf16>
    tpu.vector_store %arg7[%c0_29, %c24], %102 {strides = array<i32>} : memref<8x32xbf16, #tpu.memory_space<vmem>>, vector<8x8xbf16>,
    %c0_30 = arith.constant 0 : index
    %c0_31 = arith.constant 0 : index
    %104 = vector.load %arg7[%c0_30, %c0_31] : memref<8x32xbf16, #tpu.memory_space<vmem>>, vector<8x32xbf16>
    %c0_32 = arith.constant 0 : index
    %c0_33 = arith.constant 0 : index
    %105 = vector.load %arg4[%c0_32, %c0_33] : memref<32x128xbf16, #tpu.memory_space<vmem>>, vector<32x128xbf16>
    %cst_34 = arith.constant dense<0.000000e+00> : vector<8x128xf32>
    %106 = tpu.matmul %104, %105, %cst_34 {dimension_numbers = #tpu.dot_dimension_numbers<[1], [0], [0], [1], [0, 0, 1, 1], [], []>} : vector<8x32xbf16>, vector<32x128xbf16>, vector<8x128xf32> -> vector<8x128xf32>
    %c0_35 = arith.constant 0 : index
    %c0_36 = arith.constant 0 : index
    %107 = vector.load %arg5[%c0_35, %c0_36] : memref<1x128xf32, #tpu.memory_space<vmem>>, vector<1x128xf32>
    %108 = vector.broadcast %107 : vector<1x128xf32> to vector<8x128xf32>
    %109 = arith.addf %106, %108 : vector<8x128xf32>
    %110 = vector.shape_cast %109 : vector<8x128xf32> to vector<1x8x128xf32>
    %c0_37 = arith.constant 0 : index
    %c0_38 = arith.constant 0 : index
    %c0_39 = arith.constant 0 : index
    %111 = vector.load %arg6[%c0_37, %c0_38, %c0_39] : memref<1x8x128xf32, #tpu.memory_space<vmem>>, vector<1x8x128xf32>
    tpu.vector_store %arg6[%c0_37, %c0_38, %c0_39], %110 {strides = array<i32>} : memref<1x8x128xf32, #tpu.memory_space<vmem>>, vector<1x8x128xf32>,
    return
  }
  func.func @transform_0(%arg0: i32) -> (i32, i32, i32) {
    %c0_i32 = arith.constant 0 : i32
    %c0_i32_0 = arith.constant 0 : i32
    %c0_i32_1 = arith.constant 0 : i32
    return %arg0, %c0_i32, %c0_i32_0 : i32, i32, i32
  }
  func.func @transform_1(%arg0: i32) -> (i32, i32, i32) {
    %c0_i32 = arith.constant 0 : i32
    %c0_i32_0 = arith.constant 0 : i32
    %c0_i32_1 = arith.constant 0 : i32
    return %arg0, %c0_i32, %c0_i32_0 : i32, i32, i32
  }
  func.func @transform_2(%arg0: i32) -> (i32, i32) {
    %c0_i32 = arith.constant 0 : i32
    %c0_i32_0 = arith.constant 0 : i32
    %c0_i32_1 = arith.constant 0 : i32
    return %c0_i32, %c0_i32_0 : i32, i32
  }
  func.func @transform_3(%arg0: i32) -> (i32, i32) {
    %c0_i32 = arith.constant 0 : i32
    %c0_i32_0 = arith.constant 0 : i32
    %c0_i32_1 = arith.constant 0 : i32
    return %c0_i32, %c0_i32_0 : i32, i32
  }
  func.func @transform_4(%arg0: i32) -> (i32, i32) {
    %c0_i32 = arith.constant 0 : i32
    %c0_i32_0 = arith.constant 0 : i32
    %c0_i32_1 = arith.constant 0 : i32
    return %c0_i32, %c0_i32_0 : i32, i32
  }
  func.func @transform_5(%arg0: i32) -> (i32, i32, i32) {
    %c0_i32 = arith.constant 0 : i32
    %c0_i32_0 = arith.constant 0 : i32
    %c0_i32_1 = arith.constant 0 : i32
    return %arg0, %c0_i32, %c0_i32_0 : i32, i32, i32
  }
}

</mosaic_0001>

<bundles_post_ra>
// kernel: tpu_custom_call.1
= control target key start
LH: loop header
LB: loop body
LE: loop exit
PB: predicated region body
PF: predicated region fallthrough
CT: control target
= control target key end

     0   :  { %10 = vsyncpa [#allocation4], 0  ;;  %s1116_s0 = inlined_call_operand.vmem [shape: bf16[2,8,128], index: 0, kind: input, shape index: {}]   ;;  %s1117_s1 = inlined_call_operand.vmem [shape: s8[2,8,8], index: 1, kind: input, shape index: {}]   ;;  %s1118_s2 = inlined_call_operand.vmem [shape: bf16[128,96], index: 2, kind: input, shape index: {}]   ;;  %s1119_s3 = inlined_call_operand.vmem [shape: bf16[32,128], index: 3, kind: input, shape index: {}]   ;;  %s1120_s4 = inlined_call_operand.vmem [shape: f32[1,128], index: 4, kind: input, shape index: {}]   ;;  %s1121_s5 = inlined_call_operand.hbm [shape: f32[2,8,128], index: 5, kind: output, shape index: {}]  }
   0x1   :  { %12 = vsyncpa [#allocation4 + $0x1], 0  ;;  %s948_s18 = smov 0   ;;  %s950_s19 = smov 0  }
   0x2   :  { %s952_s20 = smov 0   ;;  %s954_s21 = smov 0  }
   0x3 LB: > { %s969_s22 = sadd.s32 4294967295, %s901_s21   ;;  %s698_s23 = sadd.s32 4294967294, %s901_s21   ;;  %s901_s21 = sphi %s954_s21, %s1127_s21   ;;  %s897_s20 = sphi %s952_s20, %s1126_s20   ;;  %s893_s19 = sphi %s950_s19, %s1125_s19   ;;  %s889_s18 = sphi %s948_s18, %s1124_s18  }
   0x4   : > { %s973_s24 = sadd.s32 1, %s901_s21   ;;  %s140_s25 = sadd.s32 1, %s897_s20 }
   0x5   : > { %s137_s26 = ssub.s32 %s901_s21, %s973_s24  ;;  %p150_p0 = scmp.ne.s32.totalorder %s897_s20, %s893_s19 }
   0x6   : > { %p138_p1 = scmp.eq.s32.totalorder %s137_s26, 0  ;;  %p151_p2 = scmp.eq.s32.totalorder %s969_s22, 1 }
   0x7   : > { %p156_p3 = scmp.ne.s32.totalorder %s893_s19, %s889_s18  ;;  %p157_p4 = scmp.eq.s32.totalorder %s698_s23, 1 }
   0x8   : > { %s984_s27 = scalar_select %p138_p1, %s897_s20, %s140_s25  }
   0x9   : > { %p986_p5 = por %p151_p2, %p150_p0  ;;  %p990_p6 = por %p157_p4, %p156_p3 }
   0xa   : > { %p701_p7 = scmp.ge.s32.totalorder %s901_s21, 1  ;;  %p198_p8 = scmp.lt.s32.totalorder %s901_s21, 3 }
   0xc   : > { %p199_p9 = pnand %p701_p7, %p198_p8 }
   0xd   : > { %p229_p10 = scmp.lt.s32.totalorder (!%p199_p9), %s969_s22, 1  ;;  %s903_s10 = smov (!%p199_p9), 88  }
   0xe   : > { %202 = sbr.rel (%p199_p9) target bundleno = 1520 (0x5f0), region = 40  ;;  %s904_s11 = smov (!%p199_p9), 96  }
   0xf   : > { %s905_s12 = smov (!%p199_p9), 56   ;;  %s906_s13 = smov (!%p199_p9), 64  }
  0x10   : > { %s909_s25 = smov (!%p199_p9), 80   ;;  %s911_s30 = smov (!%p199_p9), 48  }
  0x11   : > { %s912_s6 = smov (!%p199_p9), 40   ;;  %s913_s7 = smov (!%p199_p9), 112  }
  0x12   : > { %s914_s8 = smov (!%p199_p9), 8   ;;  %s226_s16 = sand.u32 (!%p199_p9), 1, %s893_s19  }
  0x13   : > { %v765_v0 = vld [vmem:[%s1118_s2 + $0x38] sm:$0xff]  ;;  %v764_v1 = vld [vmem:[%s1118_s2 + $0x30] sm:$0xff]  ;;  %v763_v2 = vld [vmem:[%s1118_s2 + $0x28] sm:$0xff]  ;;  %s1016_s17 = scalar_select %p229_p10, %s969_s22, 1  ;;  %vm363_vm0 = vcmask 1043456   ;;  %vm328_vm1 = vcmask 64512  }
  0x14   : > { %303 = vmatpush.bf16.msra.mxu0 %v765_v0  ;;  %v762_v3 = vld [vmem:[%s1118_s2 + $0x20] sm:$0xff]  ;;  %v761_v4 = vld [vmem:[%s1118_s2 + $0x18] sm:$0xff]  ;;  %v760_v5 = vld [vmem:[%s1118_s2 + $0x10] sm:$0xff]  ;;  %v907_v23 = vmov 0.0   ;;  %vm381_vm3 = vcmask 60416   ;;  %vm444_vm4 = vcmask 126016  }
  0x15   : > { %v759_v6 = vld [vmem:[%s1118_s2 + $0x8] sm:$0xff]  ;;  %s703_s26 = sshll.u32 %s1016_s17, 2  ;;  %v758_v7 = vld [vmem:[%s1118_s2] sm:$0xff]  ;;  %s704_s14 = sshll.u32 %s1016_s17, 1  ;;  %vm507_vm5 = vcmask 191616   ;;  %vm570_vm6 = vcmask 257216  }
  0x16   : > { %s232_s9 = scalar_lea.vmem %s1116_s0, %s703_s26  ;;  %s236_s23 = scalar_lea.vmem %s1117_s1, %s704_s14  ;;  %vm593_vm7 = vcmask 261120  }
  0x17   : > { %v238_v8 = vld [vmem:[%s232_s9] sm:$0xf]  ;;  %s908_s17 = smov 120   ;;  %s910_s26 = smov 72  }
  0x18   : > { %304 = vmatpush.bf16.msra.mxu0 %v764_v1  ;;  %v317_v21 = vld [vmem:[%s236_s23] sm:$0x3]  ;;  %s915_s9 = smov 104   ;;  %s755_s23 = sshll.u32 %s969_s22, 3 }
  0x19   : > { %v318_v22 = vunpack.c.0.s8 %v317_v21  ;;  %s859_s15 = scalar_lea.hbm %s1121_s5, 16 }
  0x1b   : > { %vm319_vm2 = vcmp.eq.s32.totalorder %v318_v22, 0 }
  0x1c   : > { %305 = vmatpush.bf16.msra.mxu0 %v763_v2  ;;  %v1043_v24 = vsel %vm319_vm2, -1e+20, %v907_v23 }
  0x20   : > { %306 = vmatpush.bf16.msra.mxu0 %v762_v3 }
  0x24   : > { %307 = vmatpush.bf16.msra.mxu0 %v761_v4 }
  0x28   : > { %308 = vmatpush.bf16.msra.mxu0 %v760_v5 }
  0x2c   : > { %309 = vmatpush.bf16.msra.mxu0 %v759_v6 }
  0x30   : > { %310 = vmatpush.bf16.msra.mxu0 %v758_v7 }
  0x33   : > { %311 = vmatmul.bf16.vlgmr.msra.gmra.mxu0 %v238_v8 }
  0xb0   : > { %v312_v9 = vpop.f32.mrf.mxu0 }
  0xb1   : > { %v316_v10 = vpack.c.bf16 %v312_v9, %v312_v9 }
  0xb3   : > { %v322_v11 = vunpack.c.l.b16 %v316_v10  ;;  %v365_v12 = vsel %vm363_vm0, %v316_v10, 0 }
  0xb4   : > { %374 = vmatpush.bf16.msra.mxu2 %v365_v12 }
  0xb5   : > { %v1029_v13 = vpack.c.b16 %v322_v11, %v322_v11 }
  0xb7   : > { %385 = vrot.lane.b32.xlu1 %v1029_v13, %s903_s10  ;;  %326 = vrot.lane.b32.xlu0 %v1029_v13, %s904_s11  ;;  %s916_s10 = smov 16   ;;  %s917_s11 = smov 24  }
  0xb8   : > { %v314_v14 = vpop.f32.mrf.mxu0 }
  0xbf   : > { %383 = vrot.lane.b32.xlu1 %v1029_v13, %s905_s12  ;;  %324 = vrot.lane.b32.xlu0 %v1029_v13, %s906_s13 }
 0x129   : > { %v386_v15 = vpop.permute.xlu1 %385  ;;  %v327_v16 = vpop.permute.xlu0 %326 }
 0x12a   : > { %v333_v17 = vsel %vm328_vm1, %v327_v16, 0  ;;  %v391_v18 = vsel %vm328_vm1, %v386_v15, 0 }
 0x12b   : > { %342 = vmatpush.bf16.xpose.msra.mxu1 %v333_v17  ;;  %400 = vmatpush.bf16.xpose.msra.mxu3 %v391_v18 }
 0x131   : > { %v384_v19 = vpop.permute.xlu1 %383  ;;  %v325_v20 = vpop.permute.xlu0 %324 }
 0x132   : > { %737 = vmatmul.msk.bf16.vlgmr.msra.gmra.mxu1 %vm328_vm1, %v325_v20  ;;  %739 = vmatmul.msk.bf16.vlgmr.msra.gmra.mxu3 %vm328_vm1, %v384_v19 }
 0x1af   : > { %v344_v25 = vpop.f32.mrf.mxu1 }
 0x1b0   : > { %v345_v26 = vadd.f32 %v344_v25, %v1043_v24 }
 0x1b2   : > { %v348_v27 = vsel %vm328_vm1, %v345_v26, -inf }
 0x1b3   : > { %349 = vmax.xlane.f32.xlu2 %v348_v27 }
 0x1b5   : > { %v402_v28 = vpop.f32.mrf.mxu3 }
 0x1b6   : > { %v403_v29 = vadd.f32 %v402_v28, %v1043_v24 }
 0x1b7   : > { %v346_v30 = vpop.f32.mrf.mxu1 }
 0x1b8   : > { %v406_v31 = vsel %vm328_vm1, %v403_v29, -inf }
 0x1bb   : > { %407 = vmax.xlane.f32.xlu2 %v406_v31 }
 0x1bd   : > { %v404_v32 = vpop.f32.mrf.mxu3 }
 0x1d3   : > { %418 = vrot.lane.b32.xlu2 %v1029_v13, %s908_s17  ;;  %s702_s17 = sshll.u32 %s226_s16, 3 }
 0x1db   : > { %448 = vrot.lane.b32.xlu2 %v1029_v13, %s909_s25 }
 0x1e3   : > { %511 = vrot.lane.b32.xlu2 %v1029_v13, %s910_s26 }
 0x1eb   : > { %446 = vrot.lane.b32.xlu2 %v1029_v13, %s911_s30  ;;  %s622_s30 = scalar_lea.hbm %s1121_s5, %s755_s23 }
 0x226   : > { %v350_v33 = vpop.xlane.xlu2 %349 }
 0x227   : > { %v351_v34 = vsub.f32 %v345_v26, %v350_v33 }
 0x229   : > { %v352_v35 = vmul.f32 1.442695, %v351_v34 }
 0x22b   : > { %823 = vpow2.f32 %v352_v35 }
 0x22e   : > { %v408_v36 = vpop.xlane.xlu2 %407 }
 0x22f   : > { %v409_v37 = vsub.f32 %v403_v29, %v408_v36 }
 0x231   : > { %v824_v38 = vpop.eup %823  ;;  %v410_v39 = vmul.f32 1.442695, %v409_v37 }
 0x232   : > { %v354_v40 = vsel %vm328_vm1, %v824_v38, 0.0 }
 0x233   : > { %825 = vpow2.f32 %v410_v39  ;;  %355 = vadd.xlane.f32.xlu0 %v354_v40  ;;  %v767_v39 = vld [vmem:[%s1119_s3 + $0x8] sm:$0xff]  ;;  %v766_v40 = vld [vmem:[%s1119_s3] sm:$0xff] }
 0x236   : > { %v419_v41 = vpop.permute.xlu2 %418 }
 0x237   : > { %v424_v42 = vsel %vm363_vm0, %v419_v41, 0 }
 0x238   : > { %433 = vmatpush.bf16.msrb.mxu2 %v424_v42 }
 0x239   : > { %v826_v43 = vpop.eup %825 }
 0x23a   : > { %v412_v44 = vsel %vm328_vm1, %v826_v43, 0.0 }
 0x23b   : > { %413 = vadd.xlane.f32.xlu1 %v412_v44 }
 0x23e   : > { %v449_v45 = vpop.permute.xlu2 %448 }
 0x23f   : > { %v454_v46 = vsel %vm328_vm1, %v449_v45, 0 }
 0x240   : > { %463 = vmatpush.bf16.xpose.msrb.mxu1 %v454_v46 }
 0x246   : > { %v512_v47 = vpop.permute.xlu2 %511 }
 0x247   : > { %509 = vrot.lane.b32.xlu0 %v1029_v13, %s912_s6  ;;  %v517_v54 = vsel %vm328_vm1, %v512_v47, 0 }
 0x24e   : > { %v447_v48 = vpop.permute.xlu2 %446 }
 0x24f   : > { %481 = vrot.lane.b32.xlu0 %v1029_v13, %s913_s7  ;;  %741 = vmatmul.msk.bf16.vlgmr.msrb.gmra.mxu1 %vm328_vm1, %v447_v48 }
 0x2a6   : > { %v356_v49 = vpop.xlane.xlu0 %355 }
 0x2a7   : > { %827 = vrcp.f32 %v356_v49 }
 0x2ad   : > { %v828_v50 = vpop.eup %827 }
 0x2ae   : > { %v358_v51 = vmul.f32 %v828_v50, %v824_v38  ;;  %v414_v52 = vpop.xlane.xlu1 %413 }
 0x2af   : > { %829 = vrcp.f32 %v414_v52 }
 0x2b0   : > { %v359_v53 = vpack.c.bf16 %v358_v51, %v358_v51 }
 0x2b2   : > { %738 = vmatmul.msk.bf16.vlgmr.msra.gmra.mxu2 %vm328_vm1, %v359_v53 }
 0x2b3   : > { %526 = vmatpush.bf16.xpose.msra.mxu2 %v517_v54 }
 0x2b5   : > { %v830_v55 = vpop.eup %829 }
 0x2b6   : > { %v416_v57 = vmul.f32 %v830_v55, %v826_v43  ;;  %v822_v43 = vld [vmem:[%s1120_s4] ss:$0 sm:$0xff] }
 0x2b8   : > { %v417_v58 = vpack.c.bf16 %v416_v57, %v416_v57 }
 0x2b9   : > { %v510_v56 = vpop.permute.xlu0 %509 }
 0x2c1   : > { %v482_v59 = vpop.permute.xlu0 %481 }
 0x2c2   : > { %740 = vmatmul.msk.bf16.vlgmr.msrb.gmra.mxu2 %vm328_vm1, %v417_v58  ;;  %v487_v60 = vsel %vm363_vm0, %v482_v59, 0 }
 0x2c3   : > { %496 = vmatpush.bf16.msrb.mxu3 %v487_v60 }
 0x2c7   : > { %603 = vmatpush.bf16.msra.mxu3 %v767_v39 }
 0x2cb   : > { %604 = vmatpush.bf16.msra.mxu3 %v766_v40 }
 0x2cc   : > { %v465_v61 = vpop.f32.mrf.mxu1 }
 0x2cd   : > { %v466_v62 = vadd.f32 %v465_v61, %v1043_v24 }
 0x2cf   : > { %v469_v63 = vsel %vm328_vm1, %v466_v62, -inf }
 0x2d0   : > { %470 = vmax.xlane.f32.xlu1 %v469_v63 }
 0x2d2   : > { %743 = vmatmul.msk.bf16.vlgmr.msra.gmra.mxu2 %vm328_vm1, %v510_v56 }
 0x2d4   : > { %v467_v0 = vpop.f32.mrf.mxu1 }
 0x335   : > { %v376_v1 = vpop.f32.mrf.mxu2 }
 0x336   : > { %v380_v2 = vpack.c.bf16 %v376_v1, %v376_v1 }
 0x338   : > { %382 = vst.msk [vmem:[#allocation2] sm:$0xf] %vm381_vm3, %v380_v2 }
 0x33d   : > { %v378_v3 = vpop.f32.mrf.mxu2 }
 0x343   : > { %v471_v4 = vpop.xlane.xlu1 %470 }
 0x344   : > { %v472_v5 = vsub.f32 %v466_v62, %v471_v4 }
 0x345   : > { %v435_v6 = vpop.f32.mrf.mxu2 }
 0x346   : > { %v473_v7 = vmul.f32 1.442695, %v472_v5  ;;  %v439_v8 = vpack.c.bf16 %v435_v6, %v435_v6 }
 0x348   : > { %831 = vpow2.f32 %v473_v7  ;;  %441 = vrot.lane.b32.xlu0 %v439_v8, %s914_s8  ;;  %s228_s8 = scalar_lea.vmem [#allocation3], %s702_s17 }
 0x34d   : > { %v437_v9 = vpop.f32.mrf.mxu2 }
 0x34e   : > { %v832_v10 = vpop.eup %831 }
 0x34f   : > { %v475_v11 = vsel %vm328_vm1, %v832_v10, 0.0 }
 0x350   : > { %476 = vadd.xlane.f32.xlu1 %v475_v11 }
 0x355   : > { %v528_v12 = vpop.f32.mrf.mxu2 }
 0x356   : > { %v529_v14 = vadd.f32 %v528_v12, %v1043_v24 }
 0x358   : > { %v532_v15 = vsel %vm328_vm1, %v529_v14, -inf }
 0x359   : > { %533 = vmax.xlane.f32.xlu2 %v532_v15 }
 0x35d   : > { %v530_v16 = vpop.f32.mrf.mxu2 }
 0x3ba   : > { %v442_v17 = vpop.permute.xlu0 %441 }
 0x3bb   : > { %445 = vst.msk [vmem:[#allocation2] sm:$0xf] %vm444_vm4, %v442_v17 }
 0x3c3   : > { %v477_v18 = vpop.xlane.xlu1 %476 }
 0x3c4   : > { %833 = vrcp.f32 %v477_v18 }
 0x3ca   : > { %v834_v19 = vpop.eup %833 }
 0x3cb   : > { %v479_v20 = vmul.f32 %v834_v19, %v832_v10 }
 0x3cc   : > { %v534_v21 = vpop.xlane.xlu2 %533 }
 0x3cd   : > { %v535_v22 = vsub.f32 %v529_v14, %v534_v21  ;;  %v480_v23 = vpack.c.bf16 %v479_v20, %v479_v20 }
 0x3cf   : > { %v536_v25 = vmul.f32 1.442695, %v535_v22  ;;  %742 = vmatmul.msk.bf16.vlgmr.msrb.gmra.mxu3 %vm328_vm1, %v480_v23 }
 0x3d1   : > { %835 = vpow2.f32 %v536_v25 }
 0x3d7   : > { %v836_v26 = vpop.eup %835 }
 0x3d8   : > { %v538_v24 = vsel %vm328_vm1, %v836_v26, 0.0 }
 0x3d9   : > { %539 = vadd.xlane.f32.xlu1 %v538_v24 }
 0x3f2   : > { %544 = vrot.lane.b32.xlu1 %v1029_v13, %s915_s9  ;;  %s624_s9 = sshll.u32 %s228_s8, 4  ;;  %s625_s9 = int_to_ptr.vmem [resolvable:$true] %s624_s9 }
 0x44c   : > { %v540_v29 = vpop.xlane.xlu1 %539 }
 0x44d   : > { %837 = vrcp.f32 %v540_v29 }
 0x452   : > { %v498_v27 = vpop.f32.mrf.mxu3 }
 0x453   : > { %v502_v28 = vpack.c.bf16 %v498_v27, %v498_v27  ;;  %v838_v31 = vpop.eup %837 }
 0x454   : > { %v542_v32 = vmul.f32 %v838_v31, %v836_v26 }
 0x455   : > { %504 = vrot.lane.b32.xlu0 %v502_v28, %s916_s10  ;;  %s626_s10 = sshll.u32 %s622_s30, 4  ;;  %s627_s10 = int_to_ptr.hbm [resolvable:$true] %s626_s10 }
 0x456   : > { %v543_v35 = vpack.c.bf16 %v542_v32, %v542_v32  ;;  %s853_s22 = sshra.s32 %s627_s10, 4  ;;  %s854_s22 = int_to_ptr.hbm [resolvable:$true] %s853_s22 }
 0x457   : > { %s855_s12 = scalar_lea.hbm %s854_s22, 8  ;;  %p860_p0 = scmp.lt.s32.totalorder %s854_s22, %s1121_s5 }
 0x458   : > { %p856_p11 = scmp.ne.s32.totalorder %s854_s22, %s855_s12  ;;  %p861_p1 = scmp.lt.s32.totalorder %s859_s15, %s855_s12 }
 0x45a   : > { %v500_v30 = vpop.f32.mrf.mxu3  ;;  %p857_p12 = pnand %p856_p11, %p986_p5  ;;  %p862_p2 = por %p861_p1, %p860_p0 }
 0x45c   : > { %p858_p13 = pneg %p857_p12 }
 0x45e   : > { %p863_p3 = pnand %p862_p2, %p858_p13 }
 0x464   : > { %v545_v33 = vpop.permute.xlu1 %544 }
 0x465   : > { %v550_v34 = vsel %vm363_vm0, %v545_v33, 0 }
 0x466   : > { %559 = vmatpush.bf16.msra.mxu1 %v550_v34 }
 0x469   : > { %744 = vmatmul.msk.bf16.vlgmr.msra.gmra.mxu1 %vm328_vm1, %v543_v35 }
 0x4c7   : > { %v505_v36 = vpop.permute.xlu0 %504 }
 0x4c8   : > { %508 = vst.msk [vmem:[#allocation2] sm:$0xf] %vm507_vm5, %v505_v36 }
 0x4e6   : > { %v561_v13 = vpop.f32.mrf.mxu1 }
 0x4e7   : > { %v565_v37 = vpack.c.bf16 %v561_v13, %v561_v13 }
 0x4e9   : > { %567 = vrot.lane.b32.xlu0 %v565_v37, %s917_s11  ;;  %s612_s11 = scalar_lea.sflag [#allocation4], %s226_s16 }
 0x4ee   : > { %v563_v38 = vpop.f32.mrf.mxu1 }
 0x55b   : > { %v568_v41 = vpop.permute.xlu0 %567 }
 0x55c   : > { %571 = vst.msk [vmem:[#allocation2] sm:$0xf] %vm570_vm6, %v568_v41 }
 0x563   : > { %v572_v42 = vld [vmem:[#allocation2] sm:$0xf] }
 0x564   : > { %753 = vmatmul.msk.bf16.vlgmr.msra.gmra.mxu3 %vm593_vm7, %v572_v42 }
 0x5e7   : > { %v606_v44 = vpop.f32.mrf.mxu3 }
 0x5e8   : > { %v607_v45 = vadd.f32 %v822_v43, %v606_v44 }
 0x5ea   : > { %610 = vst [vmem:[%s228_s8] sm:$0xff] %v607_v45 }
 0x5eb   : > { %866 = shalt.err (!%p863_p3)
}
 0x5ec   : > { %768 = dma.vmem_to_hbm [thread:$0]  (%p986_p5), %s625_s9, 128, %s627_s10, %s612_s11  }
 0x5ef   : > { %v608_v46 = vpop.f32.mrf.mxu3 }
 0x5f0 PF: > { %p774_p4 = scmp.ge.s32.totalorder %s901_s21, 2  ;;  %s638_s16 = sand.u32 1, %s889_s18  }
 0x5f1   : > { %s639_s25 = scalar_lea.sflag [#allocation4], %s638_s16 }
 0x5f2   : > { %p771_p7 = pnand %p774_p4, %p990_p6 }
 0x5f4   : > { %p772_p8 = pneg %p771_p7 }
 0x5f6   : > { %884 = dma.done.wait (%p772_p8), %s639_s25, 128  }
 0x5f7   : > { %886 = vsyncadd (%p772_p8), %s639_s25, 4294967168  ;;  %p15_p9 = scmp.ge.s32.totalorder %s973_s24, 4   ;;  %s1124_s18 = smov %s893_s19 }
 0x5f8   : > { %s1125_s19 = smov %s897_s20  ;;  %s1126_s20 = smov %s984_s27 }
 0x5f9   : > { %s1127_s21 = smov %s973_s24  ;;  %17 = sbr.rel (!%p15_p9) target bundleno = 3 (0x3), region = 78 }
 0x5fe   :  { %645 = vsyncpa [#allocation4], 1 }
 0x5ff   :  { %647 = vsyncpa [#allocation4 + $0x1], 1 }

</bundles_post_ra>
